<compile_context>
chip_gen: v5e
topology: v5e:2x2
jax: 0.10.0
libtpu: 0.0.40
codegen_flags: <defaults>
</compile_context>

<pallas_src>
import functools
import math

import jax
import jax.numpy as jnp
from jax.experimental import pallas as pl
from jax.experimental.pallas import tpu as pltpu

HIDDEN_SIZE = 6
LANE = 128            # lane width: pad all feature dims to this for unmasked vst
TILE_B_MAX = 512      # batch tile: >=512 rows sits near HBM roofline; tiny VMEM footprint
                      # (2 bufs x (in tile + 2 out tiles) ~ 1.25 MiB @ 512 rows -> safe on
                      #  v5e 16MiB / v6e 32MiB scoped and v7x 64MiB physical VMEM)


def _round_up(x: int, m: int) -> int:
    return ((x + m - 1) // m) * m


def _fma_linear(x, w_ref, b_ref):
    """y = x @ W + b with a K-unrolled VPU broadcast-multiply-accumulate.

    x      : (TILE_B, >=K) activations (only the first K columns are contracted)
    w_ref  : (K, 128)      weight tile (output dim zero-padded to 128 lanes)
    b_ref  : (1, 128)      bias tile
    K is 4 or 6 here: <5% utilization of a 128/256-wide MXU and three dependent
    dot->MRF-pop chains, so an unrolled FMA on the VPU is strictly better.
    """
    k_dim = w_ref.shape[0]
    acc = x[:, 0:1] * w_ref[0:1, :] + b_ref[...]
    for k in range(1, k_dim):                       # static unroll (k_dim is 4 or 6)
        acc = acc + x[:, k:k + 1] * w_ref[k:k + 1, :]
    return acc


def _mlp_fused_kernel(s_ref, w1_ref, b1_ref, w2_ref, b2_ref, w3_ref, b3_ref,
                      logits_ref, probs_ref, *, action_dim: int):
    """3-layer MLP forward for one batch tile; emits BOTH heads (critic + actor)."""
    x = s_ref[...]                                                  # (TILE_B, state_dim)

    h1 = jnp.maximum(_fma_linear(x, w1_ref, b1_ref), 0.0)           # (TILE_B, 128)
    h2 = jnp.maximum(_fma_linear(h1, w2_ref, b2_ref), 0.0)          # (TILE_B, 128)
    logits = _fma_linear(h2, w3_ref, b3_ref)                        # (TILE_B, 128)

    # critic head: raw logits (padded cols are exactly 0 since W3/b3 pads are 0)
    logits_ref[...] = logits

    # actor head: softmax over the *real* action columns only (mask the lane padding)
    lane = jax.lax.broadcasted_iota(jnp.int32, logits.shape, 1)
    masked = jnp.where(lane < action_dim, logits, jnp.float32(-1e30))
    m = jnp.max(masked, axis=-1, keepdims=True)
    e = jnp.exp(masked - m)                                         # pad cols underflow to 0
    denom = jnp.sum(e, axis=-1, keepdims=True)                      # >= 1 (max entry is 1)
    # exact normalization: keeps sum(probs) == 1 to f32 precision (approx reciprocal
    # previously shifted every prob in a row by the same relative error -> sum drift)
    probs_ref[...] = e / denom


def neural_net_forward_fused(s, params, action_dim, *, tile_b_max=TILE_B_MAX):
    """s: (B, state_dim) f32. Returns (critic_logits, actor_probs), both (B, action_dim)."""
    B, state_dim = s.shape
    pad = params["w1"].shape[1]                                     # 128

    # batch tiling: pick the largest tile <= tile_b_max, pad batch rows to a multiple
    tile_b = min(tile_b_max, _round_up(max(B, 1), 8))
    B_pad = _round_up(B, tile_b)
    if B_pad != B:
        s = jnp.pad(s, ((0, B_pad - B), (0, 0)))
    grid = (B_pad // tile_b,)

    row_in_spec = pl.BlockSpec((tile_b, state_dim), lambda i: (i, 0))
    row_out_spec = pl.BlockSpec((tile_b, pad), lambda i: (i, 0))

    def resident(arr):
        # full-array block, constant index -> stays VMEM-resident across grid steps
        return pl.BlockSpec(arr.shape, lambda i: (0, 0))

    kernel = functools.partial(_mlp_fused_kernel, action_dim=action_dim)

    logits, probs = pl.pallas_call(
        kernel,
        grid=grid,
        out_shape=(jax.ShapeDtypeStruct((B_pad, pad), jnp.float32),
                   jax.ShapeDtypeStruct((B_pad, pad), jnp.float32)),
        in_specs=[row_in_spec,
                  resident(params["w1"]), resident(params["b1"]),
                  resident(params["w2"]), resident(params["b2"]),
                  resident(params["w3"]), resident(params["b3"])],
        out_specs=(row_out_spec, row_out_spec),
        compiler_params=pltpu.CompilerParams(
            dimension_semantics=("parallel",),        # shards batch tiles across TCs on v7x
            vmem_limit_bytes=32 * 1024 * 1024,        # explicit budget; usage is ~1-2 MiB
        ),
    )(s,
      params["w1"], params["b1"],
      params["w2"], params["b2"],
      params["w3"], params["b3"])

    return logits[:B, :action_dim], probs[:B, :action_dim]


def neural_net_forward(s, params, action_dim, *, b_actor: bool):
    """API parity with the PyTorch module: returns one head. Prefer the fused call
    when both heads are needed (one kernel launch, one set of weight DMAs)."""
    logits, probs = neural_net_forward_fused(s, params, action_dim)
    return probs if b_actor else logits


def init_params(key, state_dim, action_dim, hidden=HIDDEN_SIZE, pad=LANE):
    """PyTorch-nn.Linear-style init (uniform +-1/sqrt(fan_in)).
    Weights stored (in, out) with the OUT dim zero-padded to `pad` lanes;
    biases stored (1, out) padded the same way."""
    ks = jax.random.split(key, 6)

    def lin(kw, kb, fan_in, fan_out):
        bound = 1.0 / math.sqrt(fan_in)
        w = jax.random.uniform(kw, (fan_in, fan_out), jnp.float32, -bound, bound)
        b = jax.random.uniform(kb, (1, fan_out), jnp.float32, -bound, bound)
        w = jnp.pad(w, ((0, 0), (0, pad - fan_out)))
        b = jnp.pad(b, ((0, 0), (0, pad - fan_out)))
        return w, b

    w1, b1 = lin(ks[0], ks[1], state_dim, hidden)
    w2, b2 = lin(ks[2], ks[3], hidden, hidden)
    w3, b3 = lin(ks[4], ks[5], hidden, action_dim)
    return {"w1": w1, "b1": b1, "w2": w2, "b2": b2, "w3": w3, "b3": b3}


def _reference_forward(s, p, hidden, action_dim):
    h1 = jnp.maximum(s @ p["w1"] + p["b1"], 0.0)[:, :hidden]
    h2 = jnp.maximum(h1 @ p["w2"] + p["b2"], 0.0)[:, :hidden]
    logits = (h2 @ p["w3"] + p["b3"])[:, :action_dim]
    return logits, jax.nn.softmax(logits, axis=-1)


if __name__ == "__main__":
    key = jax.random.PRNGKey(0)
    k_in, k_params = jax.random.split(key)

    batch, state_dim, action_dim = 2, 4, 3
    s = jax.random.normal(k_in, (batch, state_dim), jnp.float32)
    params = init_params(k_params, state_dim, action_dim)

    # single fused launch returns both heads (critic logits + actor softmax)
    out_critic, out_actor = neural_net_forward_fused(s, params, action_dim)
    jax.block_until_ready(out_critic)
    jax.block_until_ready(out_actor)

    ref_critic, ref_actor = _reference_forward(s, params, HIDDEN_SIZE, action_dim)
    assert out_critic.shape == (batch, action_dim)
    assert out_actor.shape == (batch, action_dim)
    assert jnp.allclose(out_critic, ref_critic, atol=1e-5, rtol=1e-5)
    assert jnp.allclose(out_actor, ref_actor, atol=1e-5, rtol=1e-5)
    assert jnp.allclose(jnp.sum(out_actor, -1), 1.0, atol=1e-5)

    # API-parity path (b_actor flag), also backed by the fused kernel
    only_actor = neural_net_forward(s, params, action_dim, b_actor=True)
    jax.block_until_ready(only_actor)
    assert jnp.allclose(only_actor, ref_actor, atol=1e-5, rtol=1e-5)

    print("KERNEL_OK")
</pallas_src>

<mosaic_0001>
module attributes {stable_mosaic.version = 11 : i64} {
  func.func @_mlp_fused_kernel(%arg0: i32, %arg1: memref<8x4xf32, #tpu.memory_space<vmem>>, %arg2: memref<4x128xf32, #tpu.memory_space<vmem>>, %arg3: memref<1x128xf32, #tpu.memory_space<vmem>>, %arg4: memref<6x128xf32, #tpu.memory_space<vmem>>, %arg5: memref<1x128xf32, #tpu.memory_space<vmem>>, %arg6: memref<6x128xf32, #tpu.memory_space<vmem>>, %arg7: memref<1x128xf32, #tpu.memory_space<vmem>>, %arg8: memref<8x128xf32, #tpu.memory_space<vmem>>, %arg9: memref<8x128xf32, #tpu.memory_space<vmem>>) attributes {dimension_semantics = [#tpu.dimension_semantics<parallel>], iteration_bounds = array<i64: 1>, scalar_prefetch = 0 : i64, scratch_operands = 0 : i64, tpu.core_type = #tpu.core_type<tc>, window_params = [{transform_indices = @transform_0, window_bounds = array<i64: 8, 4>}, {pipeline_mode = #tpu.pipeline_mode<synchronous>, transform_indices = @transform_1, window_bounds = array<i64: 4, 128>}, {pipeline_mode = #tpu.pipeline_mode<synchronous>, transform_indices = @transform_2, window_bounds = array<i64: 1, 128>}, {pipeline_mode = #tpu.pipeline_mode<synchronous>, transform_indices = @transform_3, window_bounds = array<i64: 6, 128>}, {pipeline_mode = #tpu.pipeline_mode<synchronous>, transform_indices = @transform_4, window_bounds = array<i64: 1, 128>}, {pipeline_mode = #tpu.pipeline_mode<synchronous>, transform_indices = @transform_5, window_bounds = array<i64: 6, 128>}, {pipeline_mode = #tpu.pipeline_mode<synchronous>, transform_indices = @transform_6, window_bounds = array<i64: 1, 128>}, {transform_indices = @transform_7, window_bounds = array<i64: 8, 128>}, {transform_indices = @transform_8, window_bounds = array<i64: 8, 128>}]} {
    %c0 = arith.constant 0 : index
    %c0_0 = arith.constant 0 : index
    %0 = vector.load %arg1[%c0, %c0_0] : memref<8x4xf32, #tpu.memory_space<vmem>>, vector<8x4xf32>
    %1 = vector.extract_strided_slice %0 {offsets = [0, 0], sizes = [8, 1], strides = [1, 1]} : vector<8x4xf32> to vector<8x1xf32>
    %c0_1 = arith.constant 0 : index
    %c0_2 = arith.constant 0 : index
    %2 = vector.load %arg2[%c0_1, %c0_2] : memref<4x128xf32, #tpu.memory_space<vmem>>, vector<1x128xf32>
    %3 = vector.broadcast %1 : vector<8x1xf32> to vector<8x128xf32>
    %4 = vector.broadcast %2 : vector<1x128xf32> to vector<8x128xf32>
    %5 = arith.mulf %3, %4 : vector<8x128xf32>
    %c0_3 = arith.constant 0 : index
    %c0_4 = arith.constant 0 : index
    %6 = vector.load %arg3[%c0_3, %c0_4] : memref<1x128xf32, #tpu.memory_space<vmem>>, vector<1x128xf32>
    %7 = vector.broadcast %6 : vector<1x128xf32> to vector<8x128xf32>
    %8 = arith.addf %5, %7 : vector<8x128xf32>
    %9 = vector.extract_strided_slice %0 {offsets = [0, 1], sizes = [8, 1], strides = [1, 1]} : vector<8x4xf32> to vector<8x1xf32>
    %c1 = arith.constant 1 : index
    %c0_5 = arith.constant 0 : index
    %10 = vector.load %arg2[%c1, %c0_5] : memref<4x128xf32, #tpu.memory_space<vmem>>, vector<1x128xf32>
    %11 = vector.broadcast %9 : vector<8x1xf32> to vector<8x128xf32>
    %12 = vector.broadcast %10 : vector<1x128xf32> to vector<8x128xf32>
    %13 = arith.mulf %11, %12 : vector<8x128xf32>
    %14 = arith.addf %8, %13 : vector<8x128xf32>
    %15 = vector.extract_strided_slice %0 {offsets = [0, 2], sizes = [8, 1], strides = [1, 1]} : vector<8x4xf32> to vector<8x1xf32>
    %c2 = arith.constant 2 : index
    %c0_6 = arith.constant 0 : index
    %16 = vector.load %arg2[%c2, %c0_6] : memref<4x128xf32, #tpu.memory_space<vmem>>, vector<1x128xf32>
    %17 = vector.broadcast %15 : vector<8x1xf32> to vector<8x128xf32>
    %18 = vector.broadcast %16 : vector<1x128xf32> to vector<8x128xf32>
    %19 = arith.mulf %17, %18 : vector<8x128xf32>
    %20 = arith.addf %14, %19 : vector<8x128xf32>
    %21 = vector.extract_strided_slice %0 {offsets = [0, 3], sizes = [8, 1], strides = [1, 1]} : vector<8x4xf32> to vector<8x1xf32>
    %c3 = arith.constant 3 : index
    %c0_7 = arith.constant 0 : index
    %22 = vector.load %arg2[%c3, %c0_7] : memref<4x128xf32, #tpu.memory_space<vmem>>, vector<1x128xf32>
    %23 = vector.broadcast %21 : vector<8x1xf32> to vector<8x128xf32>
    %24 = vector.broadcast %22 : vector<1x128xf32> to vector<8x128xf32>
    %25 = arith.mulf %23, %24 : vector<8x128xf32>
    %26 = arith.addf %20, %25 : vector<8x128xf32>
    %cst = arith.constant 0.000000e+00 : f32
    %27 = vector.broadcast %cst : f32 to vector<8x128xf32>
    %28 = arith.maximumf %26, %27 : vector<8x128xf32>
    %29 = vector.extract_strided_slice %28 {offsets = [0, 0], sizes = [8, 1], strides = [1, 1]} : vector<8x128xf32> to vector<8x1xf32>
    %c0_8 = arith.constant 0 : index
    %c0_9 = arith.constant 0 : index
    %30 = vector.load %arg4[%c0_8, %c0_9] : memref<6x128xf32, #tpu.memory_space<vmem>>, vector<1x128xf32>
    %31 = vector.broadcast %29 : vector<8x1xf32> to vector<8x128xf32>
    %32 = vector.broadcast %30 : vector<1x128xf32> to vector<8x128xf32>
    %33 = arith.mulf %31, %32 : vector<8x128xf32>
    %c0_10 = arith.constant 0 : index
    %c0_11 = arith.constant 0 : index
    %34 = vector.load %arg5[%c0_10, %c0_11] : memref<1x128xf32, #tpu.memory_space<vmem>>, vector<1x128xf32>
    %35 = vector.broadcast %34 : vector<1x128xf32> to vector<8x128xf32>
    %36 = arith.addf %33, %35 : vector<8x128xf32>
    %37 = vector.extract_strided_slice %28 {offsets = [0, 1], sizes = [8, 1], strides = [1, 1]} : vector<8x128xf32> to vector<8x1xf32>
    %c1_12 = arith.constant 1 : index
    %c0_13 = arith.constant 0 : index
    %38 = vector.load %arg4[%c1_12, %c0_13] : memref<6x128xf32, #tpu.memory_space<vmem>>, vector<1x128xf32>
    %39 = vector.broadcast %37 : vector<8x1xf32> to vector<8x128xf32>
    %40 = vector.broadcast %38 : vector<1x128xf32> to vector<8x128xf32>
    %41 = arith.mulf %39, %40 : vector<8x128xf32>
    %42 = arith.addf %36, %41 : vector<8x128xf32>
    %43 = vector.extract_strided_slice %28 {offsets = [0, 2], sizes = [8, 1], strides = [1, 1]} : vector<8x128xf32> to vector<8x1xf32>
    %c2_14 = arith.constant 2 : index
    %c0_15 = arith.constant 0 : index
    %44 = vector.load %arg4[%c2_14, %c0_15] : memref<6x128xf32, #tpu.memory_space<vmem>>, vector<1x128xf32>
    %45 = vector.broadcast %43 : vector<8x1xf32> to vector<8x128xf32>
    %46 = vector.broadcast %44 : vector<1x128xf32> to vector<8x128xf32>
    %47 = arith.mulf %45, %46 : vector<8x128xf32>
    %48 = arith.addf %42, %47 : vector<8x128xf32>
    %49 = vector.extract_strided_slice %28 {offsets = [0, 3], sizes = [8, 1], strides = [1, 1]} : vector<8x128xf32> to vector<8x1xf32>
    %c3_16 = arith.constant 3 : index
    %c0_17 = arith.constant 0 : index
    %50 = vector.load %arg4[%c3_16, %c0_17] : memref<6x128xf32, #tpu.memory_space<vmem>>, vector<1x128xf32>
    %51 = vector.broadcast %49 : vector<8x1xf32> to vector<8x128xf32>
    %52 = vector.broadcast %50 : vector<1x128xf32> to vector<8x128xf32>
    %53 = arith.mulf %51, %52 : vector<8x128xf32>
    %54 = arith.addf %48, %53 : vector<8x128xf32>
    %55 = vector.extract_strided_slice %28 {offsets = [0, 4], sizes = [8, 1], strides = [1, 1]} : vector<8x128xf32> to vector<8x1xf32>
    %c4 = arith.constant 4 : index
    %c0_18 = arith.constant 0 : index
    %56 = vector.load %arg4[%c4, %c0_18] : memref<6x128xf32, #tpu.memory_space<vmem>>, vector<1x128xf32>
    %57 = vector.broadcast %55 : vector<8x1xf32> to vector<8x128xf32>
    %58 = vector.broadcast %56 : vector<1x128xf32> to vector<8x128xf32>
    %59 = arith.mulf %57, %58 : vector<8x128xf32>
    %60 = arith.addf %54, %59 : vector<8x128xf32>
    %61 = vector.extract_strided_slice %28 {offsets = [0, 5], sizes = [8, 1], strides = [1, 1]} : vector<8x128xf32> to vector<8x1xf32>
    %c5 = arith.constant 5 : index
    %c0_19 = arith.constant 0 : index
    %62 = vector.load %arg4[%c5, %c0_19] : memref<6x128xf32, #tpu.memory_space<vmem>>, vector<1x128xf32>
    %63 = vector.broadcast %61 : vector<8x1xf32> to vector<8x128xf32>
    %64 = vector.broadcast %62 : vector<1x128xf32> to vector<8x128xf32>
    %65 = arith.mulf %63, %64 : vector<8x128xf32>
    %66 = arith.addf %60, %65 : vector<8x128xf32>
    %cst_20 = arith.constant 0.000000e+00 : f32
    %67 = vector.broadcast %cst_20 : f32 to vector<8x128xf32>
    %68 = arith.maximumf %66, %67 : vector<8x128xf32>
    %69 = vector.extract_strided_slice %68 {offsets = [0, 0], sizes = [8, 1], strides = [1, 1]} : vector<8x128xf32> to vector<8x1xf32>
    %c0_21 = arith.constant 0 : index
    %c0_22 = arith.constant 0 : index
    %70 = vector.load %arg6[%c0_21, %c0_22] : memref<6x128xf32, #tpu.memory_space<vmem>>, vector<1x128xf32>
    %71 = vector.broadcast %69 : vector<8x1xf32> to vector<8x128xf32>
    %72 = vector.broadcast %70 : vector<1x128xf32> to vector<8x128xf32>
    %73 = arith.mulf %71, %72 : vector<8x128xf32>
    %c0_23 = arith.constant 0 : index
    %c0_24 = arith.constant 0 : index
    %74 = vector.load %arg7[%c0_23, %c0_24] : memref<1x128xf32, #tpu.memory_space<vmem>>, vector<1x128xf32>
    %75 = vector.broadcast %74 : vector<1x128xf32> to vector<8x128xf32>
    %76 = arith.addf %73, %75 : vector<8x128xf32>
    %77 = vector.extract_strided_slice %68 {offsets = [0, 1], sizes = [8, 1], strides = [1, 1]} : vector<8x128xf32> to vector<8x1xf32>
    %c1_25 = arith.constant 1 : index
    %c0_26 = arith.constant 0 : index
    %78 = vector.load %arg6[%c1_25, %c0_26] : memref<6x128xf32, #tpu.memory_space<vmem>>, vector<1x128xf32>
    %79 = vector.broadcast %77 : vector<8x1xf32> to vector<8x128xf32>
    %80 = vector.broadcast %78 : vector<1x128xf32> to vector<8x128xf32>
    %81 = arith.mulf %79, %80 : vector<8x128xf32>
    %82 = arith.addf %76, %81 : vector<8x128xf32>
    %83 = vector.extract_strided_slice %68 {offsets = [0, 2], sizes = [8, 1], strides = [1, 1]} : vector<8x128xf32> to vector<8x1xf32>
    %c2_27 = arith.constant 2 : index
    %c0_28 = arith.constant 0 : index
    %84 = vector.load %arg6[%c2_27, %c0_28] : memref<6x128xf32, #tpu.memory_space<vmem>>, vector<1x128xf32>
    %85 = vector.broadcast %83 : vector<8x1xf32> to vector<8x128xf32>
    %86 = vector.broadcast %84 : vector<1x128xf32> to vector<8x128xf32>
    %87 = arith.mulf %85, %86 : vector<8x128xf32>
    %88 = arith.addf %82, %87 : vector<8x128xf32>
    %89 = vector.extract_strided_slice %68 {offsets = [0, 3], sizes = [8, 1], strides = [1, 1]} : vector<8x128xf32> to vector<8x1xf32>
    %c3_29 = arith.constant 3 : index
    %c0_30 = arith.constant 0 : index
    %90 = vector.load %arg6[%c3_29, %c0_30] : memref<6x128xf32, #tpu.memory_space<vmem>>, vector<1x128xf32>
    %91 = vector.broadcast %89 : vector<8x1xf32> to vector<8x128xf32>
    %92 = vector.broadcast %90 : vector<1x128xf32> to vector<8x128xf32>
    %93 = arith.mulf %91, %92 : vector<8x128xf32>
    %94 = arith.addf %88, %93 : vector<8x128xf32>
    %95 = vector.extract_strided_slice %68 {offsets = [0, 4], sizes = [8, 1], strides = [1, 1]} : vector<8x128xf32> to vector<8x1xf32>
    %c4_31 = arith.constant 4 : index
    %c0_32 = arith.constant 0 : index
    %96 = vector.load %arg6[%c4_31, %c0_32] : memref<6x128xf32, #tpu.memory_space<vmem>>, vector<1x128xf32>
    %97 = vector.broadcast %95 : vector<8x1xf32> to vector<8x128xf32>
    %98 = vector.broadcast %96 : vector<1x128xf32> to vector<8x128xf32>
    %99 = arith.mulf %97, %98 : vector<8x128xf32>
    %100 = arith.addf %94, %99 : vector<8x128xf32>
    %101 = vector.extract_strided_slice %68 {offsets = [0, 5], sizes = [8, 1], strides = [1, 1]} : vector<8x128xf32> to vector<8x1xf32>
    %c5_33 = arith.constant 5 : index
    %c0_34 = arith.constant 0 : index
    %102 = vector.load %arg6[%c5_33, %c0_34] : memref<6x128xf32, #tpu.memory_space<vmem>>, vector<1x128xf32>
    %103 = vector.broadcast %101 : vector<8x1xf32> to vector<8x128xf32>
    %104 = vector.broadcast %102 : vector<1x128xf32> to vector<8x128xf32>
    %105 = arith.mulf %103, %104 : vector<8x128xf32>
    %106 = arith.addf %100, %105 : vector<8x128xf32>
    %c0_35 = arith.constant 0 : index
    %c0_36 = arith.constant 0 : index
    %107 = vector.load %arg8[%c0_35, %c0_36] : memref<8x128xf32, #tpu.memory_space<vmem>>, vector<8x128xf32>
    tpu.vector_store %arg8[%c0_35, %c0_36], %106 {strides = array<i32>} : memref<8x128xf32, #tpu.memory_space<vmem>>, vector<8x128xf32>,
    %108 = tpu.iota {dimensions = array<i32: 1>} : vector<8x128xi32>
    %c3_i32 = arith.constant 3 : i32
    %109 = vector.broadcast %c3_i32 : i32 to vector<8x128xi32>
    %110 = arith.cmpi slt, %108, %109 : vector<8x128xi32>
    %cst_37 = arith.constant -1.000000e+30 : f32
    %111 = vector.broadcast %cst_37 : f32 to vector<8x128xf32>
    %112 = arith.select %110, %106, %111 : vector<8x128xi1>, vector<8x128xf32>
    %cst_38 = arith.constant dense<0xFF800000> : vector<8xf32>
    %113 = vector.multi_reduction <maximumf>, %112, %cst_38 [1] : vector<8x128xf32> to vector<8xf32>
    %114 = vector.shape_cast %113 : vector<8xf32> to vector<8x1xf32>
    %115 = vector.broadcast %114 : vector<8x1xf32> to vector<8x128xf32>
    %116 = arith.subf %112, %115 : vector<8x128xf32>
    %117 = math.exp %116 : vector<8x128xf32>
    %cst_39 = arith.constant dense<0.000000e+00> : vector<8xf32>
    %118 = vector.multi_reduction <add>, %117, %cst_39 [1] : vector<8x128xf32> to vector<8xf32>
    %119 = vector.shape_cast %118 : vector<8xf32> to vector<8x1xf32>
    %120 = vector.broadcast %119 : vector<8x1xf32> to vector<8x128xf32>
    %121 = arith.divf %117, %120 : vector<8x128xf32>
    %c0_40 = arith.constant 0 : index
    %c0_41 = arith.constant 0 : index
    %122 = vector.load %arg9[%c0_40, %c0_41] : memref<8x128xf32, #tpu.memory_space<vmem>>, vector<8x128xf32>
    tpu.vector_store %arg9[%c0_40, %c0_41], %121 {strides = array<i32>} : memref<8x128xf32, #tpu.memory_space<vmem>>, vector<8x128xf32>,
    return
  }
  func.func @transform_0(%arg0: i32) -> (i32, i32) {
    %c0_i32 = arith.constant 0 : i32
    %c0_i32_0 = arith.constant 0 : i32
    return %arg0, %c0_i32 : i32, i32
  }
  func.func @transform_1(%arg0: i32) -> (i32, i32) {
    %c0_i32 = arith.constant 0 : i32
    %c0_i32_0 = arith.constant 0 : i32
    %c0_i32_1 = arith.constant 0 : i32
    return %c0_i32, %c0_i32_0 : i32, i32
  }
  func.func @transform_2(%arg0: i32) -> (i32, i32) {
    %c0_i32 = arith.constant 0 : i32
    %c0_i32_0 = arith.constant 0 : i32
    %c0_i32_1 = arith.constant 0 : i32
    return %c0_i32, %c0_i32_0 : i32, i32
  }
  func.func @transform_3(%arg0: i32) -> (i32, i32) {
    %c0_i32 = arith.constant 0 : i32
    %c0_i32_0 = arith.constant 0 : i32
    %c0_i32_1 = arith.constant 0 : i32
    return %c0_i32, %c0_i32_0 : i32, i32
  }
  func.func @transform_4(%arg0: i32) -> (i32, i32) {
    %c0_i32 = arith.constant 0 : i32
    %c0_i32_0 = arith.constant 0 : i32
    %c0_i32_1 = arith.constant 0 : i32
    return %c0_i32, %c0_i32_0 : i32, i32
  }
  func.func @transform_5(%arg0: i32) -> (i32, i32) {
    %c0_i32 = arith.constant 0 : i32
    %c0_i32_0 = arith.constant 0 : i32
    %c0_i32_1 = arith.constant 0 : i32
    return %c0_i32, %c0_i32_0 : i32, i32
  }
  func.func @transform_6(%arg0: i32) -> (i32, i32) {
    %c0_i32 = arith.constant 0 : i32
    %c0_i32_0 = arith.constant 0 : i32
    %c0_i32_1 = arith.constant 0 : i32
    return %c0_i32, %c0_i32_0 : i32, i32
  }
  func.func @transform_7(%arg0: i32) -> (i32, i32) {
    %c0_i32 = arith.constant 0 : i32
    %c0_i32_0 = arith.constant 0 : i32
    return %arg0, %c0_i32 : i32, i32
  }
  func.func @transform_8(%arg0: i32) -> (i32, i32) {
    %c0_i32 = arith.constant 0 : i32
    %c0_i32_0 = arith.constant 0 : i32
    return %arg0, %c0_i32 : i32, i32
  }
}

</mosaic_0001>

<bundles_post_ra>
// kernel: tpu_custom_call.1
= control target key start
LH: loop header
LB: loop body
LE: loop exit
PB: predicated region body
PF: predicated region fallthrough
CT: control target
= control target key end

     0   :  { %14 = vsyncpa [#allocation3], 0  ;;  %s574_s0 = inlined_call_operand.vmem [shape: f32[8,4], index: 0, kind: input, shape index: {}]   ;;  %s575_s1 = inlined_call_operand.hbm [shape: f32[4,128], index: 1, kind: input, shape index: {}]   ;;  %s576_s2 = inlined_call_operand.hbm [shape: f32[1,128], index: 2, kind: input, shape index: {}]   ;;  %s577_s3 = inlined_call_operand.vmem [shape: f32[6,128], index: 3, kind: input, shape index: {}]   ;;  %s578_s4 = inlined_call_operand.hbm [shape: f32[1,128], index: 4, kind: input, shape index: {}]   ;;  %s579_s5 = inlined_call_operand.vmem [shape: f32[6,128], index: 5, kind: input, shape index: {}]   ;;  %s580_s6 = inlined_call_operand.vmem [shape: f32[1,128], index: 6, kind: input, shape index: {}]   ;;  %s581_s7 = inlined_call_operand.hbm [shape: f32[8,128], index: 7, kind: output, shape index: {0}]   ;;  %s582_s8 = inlined_call_operand.hbm [shape: f32[8,128], index: 8, kind: output, shape index: {1}]  }
   0x1   :  { %15 = vsyncpa [#allocation6], 0 }
   0x2   :  { %16 = vsyncpa [#allocation4], 0  ;;  %s36_s29 = sshll.u32 %s576_s2, 4  ;;  %s37_s29 = int_to_ptr.hbm [resolvable:$true] %s36_s29 }
   0x3   :  { %17 = vsyncpa [#allocation10], 0  ;;  %s458_s30 = smov [#allocation5]   ;;  %s25_s12 = sshll.u32 %s575_s1, 4  ;;  %s26_s12 = int_to_ptr.hbm [resolvable:$true] %s25_s12 }
   0x4   :  { %s38_s9 = sshll.u32 %s458_s30, 4  ;;  %s459_s13 = smov [#allocation2]   ;;  %s39_s9 = int_to_ptr.vmem [resolvable:$true] %s38_s9 }
   0x5   :  { %41 = dma.hbm_to_vmem [thread:$0]  %s37_s29, 16, %s39_s9, [#allocation6]  }
   0x6   :  { %s27_s14 = sshll.u32 %s459_s13, 4  ;;  %s49_s17 = sshll.u32 %s578_s4, 4  ;;  %s28_s14 = int_to_ptr.vmem [resolvable:$true] %s27_s14  ;;  %s50_s17 = int_to_ptr.hbm [resolvable:$true] %s49_s17 }
   0x7   :  { %30 = dma.hbm_to_vmem [thread:$0]  %s26_s12, 64, %s28_s14, [#allocation3]  }
   0x8   :  { %s460_s2 = smov [#allocation7]  }
   0x9   :  { %s51_s18 = sshll.u32 %s460_s2, 4  ;;  %s52_s18 = int_to_ptr.vmem [resolvable:$true] %s51_s18 }
   0xa   :  { %54 = dma.hbm_to_vmem [thread:$0]  %s50_s17, 16, %s52_s18, [#allocation6]  }
   0xb   :  { %450 = dma.done.wait [#allocation3], 64  }
   0xc   :  { %451 = vsyncadd [#allocation3], 4294967232 }
   0xd   :  { %452 = dma.done.wait [#allocation6], 32  }
   0xe   :  { %453 = vsyncadd [#allocation6], 4294967264  ;;  %v461_v0 = vmov 0   ;;  %v462_v1 = vmov 2   ;;  %v71_v2 = vld [vmem:[%s574_s0] sm:$0xff]  ;;  %v463_v3 = vmov 1  }
   0xf   :  { %290 = vset.pattern.permute.xlu0 %v461_v0  ;;  %292 = vset.pattern.permute.xlu1 %v462_v1  ;;  %v464_v4 = vmov 3   ;;  %v465_v5 = vmov 4   ;;  %v307_v8 = vld [vmem:[#allocation2] ss:$0 sm:$0xff]  ;;  %v308_v9 = vld [vmem:[#allocation5] ss:$0 sm:$0xff] }
  0x10   :  { %294 = vset.pattern.permute.xlu2 %v461_v0  ;;  %75 = vperm.xlu0 %290, %v71_v2   ;;  %v310_v11 = vld [vmem:[#allocation2 + $0x1] ss:$0 sm:$0xff]  ;;  %v309_v12 = vld [vmem:[#allocation2 + $0x2] ss:$0 sm:$0xff]  ;;  %v311_v13 = vld [vmem:[#allocation2 + $0x3] ss:$0 sm:$0xff] }
  0x11   :  { %95 = vperm.xlu1 %292, %v71_v2   ;;  %v466_v24 = vmov 5   ;;  %v312_v26 = vld [vmem:[%s577_s3] ss:$0 sm:$0xff]  ;;  %v314_v28 = vld [vmem:[%s577_s3 + $0x1] ss:$0 sm:$0xff]  ;;  %s252_s19 = sshll.u32 %s581_s7, 4  ;;  %s253_s19 = int_to_ptr.hbm [resolvable:$true] %s252_s19 }
  0x12   :  { %v313_v29 = vld [vmem:[#allocation7] ss:$0 sm:$0xff]  ;;  %v317_v32 = vld [vmem:[%s577_s3 + $0x2] ss:$0 sm:$0xff]  ;;  %v315_v34 = vld [vmem:[%s577_s3 + $0x3] ss:$0 sm:$0xff] }
  0x13   :  { %v316_v41 = vld [vmem:[%s577_s3 + $0x4] ss:$0 sm:$0xff]  ;;  %v318_v44 = vld [vmem:[%s577_s3 + $0x5] ss:$0 sm:$0xff]  ;;  %v319_v52 = vld [vmem:[%s579_s5] ss:$0 sm:$0xff] }
  0x14   :  { %v320_v53 = vld [vmem:[%s580_s6] ss:$0 sm:$0xff]  ;;  %v324_v55 = vld [vmem:[%s579_s5 + $0x1] ss:$0 sm:$0xff]  ;;  %v321_v57 = vld [vmem:[%s579_s5 + $0x2] ss:$0 sm:$0xff] }
  0x15   :  { %v323_v63 = vld [vmem:[%s579_s5 + $0x3] ss:$0 sm:$0xff]  ;;  %s467_s0 = smov [#allocation8]   ;;  %s468_s20 = smov [#allocation9]  }
  0x16   :  { %s250_s4 = sshll.u32 %s467_s0, 4  ;;  %s261_s7 = sshll.u32 %s468_s20, 4  ;;  %s251_s4 = int_to_ptr.vmem [resolvable:$true] %s250_s4  ;;  %s262_s7 = int_to_ptr.vmem [resolvable:$true] %s261_s7 }
  0x17   :  { %s263_s23 = sshll.u32 %s582_s8, 4  ;;  %s264_s23 = int_to_ptr.hbm [resolvable:$true] %s263_s23 }
  0x18   :  { %291 = vset.pattern.permute.xlu0 %v463_v3 }
  0x19   :  { %293 = vset.pattern.permute.xlu1 %v464_v4  ;;  %87 = vperm.xlu0 %291, %v71_v2  }
  0x1a   :  { %103 = vperm.xlu1 %293, %v71_v2  }
  0x21   :  { %298 = vset.pattern.permute.xlu0 %v465_v5 }
  0x22   :  { %296 = vset.pattern.permute.xlu1 %v462_v1 }
  0x82   :  { %v76_v6 = vpop.permute.xlu0 %75 }
  0x83   :  { %v96_v7 = vpop.permute.xlu1 %95  ;;  %v79_v10 = vmul.f32 %v307_v8, %v76_v6 }
  0x84   :  { %v99_v18 = vmul.f32 %v309_v12, %v96_v7 }
  0x85   :  { %v84_v16 = vadd.f32 %v308_v9, %v79_v10 }
  0x8b   :  { %v88_v14 = vpop.permute.xlu0 %87 }
  0x8c   :  { %v104_v15 = vpop.permute.xlu1 %103  ;;  %v91_v17 = vmul.f32 %v310_v11, %v88_v14 }
  0x8d   :  { %v107_v20 = vmul.f32 %v311_v13, %v104_v15 }
  0x8e   :  { %v92_v19 = vadd.f32 %v91_v17, %v84_v16 }
  0x90   :  { %v100_v21 = vadd.f32 %v99_v18, %v92_v19 }
  0x92   :  { %v108_v22 = vadd.f32 %v107_v20, %v100_v21 }
  0x94   :  { %v109_v23 = vmax.f32 %v108_v22, 0.0 }
  0x96   :  { %149 = vperm.xlu0 %298, %v109_v23   ;;  %133 = vperm.xlu1 %296, %v109_v23  }
  0x97   :  { %113 = vperm.xlu2 %294, %v109_v23  }
  0x9e   :  { %299 = vset.pattern.permute.xlu1 %v466_v24  ;;  %303 = vset.pattern.permute.xlu0 %v464_v4 }
  0x9f   :  { %295 = vset.pattern.permute.xlu2 %v463_v3  ;;  %157 = vperm.xlu1 %299, %v109_v23  }
  0xa0   :  { %125 = vperm.xlu2 %295, %v109_v23  }
  0xa7   :  { %301 = vset.pattern.permute.xlu1 %v463_v3  ;;  %v325_v3 = vld [vmem:[%s579_s5 + $0x4] ss:$0 sm:$0xff] }
  0xa8   :  { %297 = vset.pattern.permute.xlu2 %v464_v4  ;;  %v322_v4 = vld [vmem:[%s579_s5 + $0x5] ss:$0 sm:$0xff] }
  0xa9   :  { %141 = vperm.xlu2 %297, %v109_v23  }
  0xb1   :  { %300 = vset.pattern.permute.xlu2 %v461_v0 }
  0xf1   :  { %v114_v25 = vpop.permute.xlu2 %113 }
  0xf2   :  { %v117_v30 = vmul.f32 %v312_v26, %v114_v25 }
  0xf4   :  { %v122_v33 = vadd.f32 %v313_v29, %v117_v30 }
  0xfa   :  { %v126_v27 = vpop.permute.xlu2 %125 }
  0xfb   :  { %v129_v31 = vmul.f32 %v314_v28, %v126_v27 }
  0xfd   :  { %v130_v36 = vadd.f32 %v129_v31, %v122_v33 }
 0x103   :  { %v142_v37 = vpop.permute.xlu2 %141 }
 0x104   :  { %v145_v40 = vmul.f32 %v315_v34, %v142_v37 }
 0x108   :  { %v134_v35 = vpop.permute.xlu1 %133  ;;  %v150_v42 = vpop.permute.xlu0 %149 }
 0x109   :  { %v137_v38 = vmul.f32 %v317_v32, %v134_v35  ;;  %v153_v45 = vmul.f32 %v316_v41, %v150_v42 }
 0x10b   :  { %v138_v39 = vadd.f32 %v137_v38, %v130_v36 }
 0x10d   :  { %v146_v43 = vadd.f32 %v145_v40, %v138_v39 }
 0x10f   :  { %v154_v47 = vadd.f32 %v153_v45, %v146_v43 }
 0x111   :  { %v158_v46 = vpop.permute.xlu1 %157 }
 0x112   :  { %v161_v48 = vmul.f32 %v318_v44, %v158_v46 }
 0x114   :  { %v162_v49 = vadd.f32 %v161_v48, %v154_v47 }
 0x116   :  { %v163_v50 = vmax.f32 %v162_v49, 0.0 }
 0x118   :  { %195 = vperm.xlu0 %303, %v163_v50   ;;  %179 = vperm.xlu1 %301, %v163_v50  }
 0x119   :  { %167 = vperm.xlu2 %300, %v163_v50  }
 0x120   :  { %304 = vset.pattern.permute.xlu1 %v465_v5  ;;  %306 = vset.pattern.permute.xlu0 %v466_v24 }
 0x121   :  { %302 = vset.pattern.permute.xlu2 %v462_v1  ;;  %203 = vperm.xlu1 %304, %v163_v50   ;;  %v218_v1 = vlaneseq }
 0x122   :  { %187 = vperm.xlu2 %302, %v163_v50  }
 0x123   :  { %v219_v8 = vand.u32 127, %v218_v1 }
 0x125   :  { %vm220_vm0 = vcmp.lt.s32.totalorder %v219_v8, 3 }
 0x12a   :  { %305 = vset.pattern.permute.xlu2 %v466_v24 }
 0x12b   :  { %211 = vperm.xlu2 %305, %v163_v50  }
 0x173   :  { %v168_v51 = vpop.permute.xlu2 %167 }
 0x174   :  { %v171_v54 = vmul.f32 %v319_v52, %v168_v51 }
 0x176   :  { %v176_v59 = vadd.f32 %v320_v53, %v171_v54 }
 0x17c   :  { %v188_v56 = vpop.permute.xlu2 %187 }
 0x17d   :  { %v191_v62 = vmul.f32 %v321_v57, %v188_v56 }
 0x185   :  { %v212_v6 = vpop.permute.xlu2 %211 }
 0x186   :  { %v215_v11 = vmul.f32 %v322_v4, %v212_v6 }
 0x18a   :  { %v180_v58 = vpop.permute.xlu1 %179  ;;  %v196_v0 = vpop.permute.xlu0 %195 }
 0x18b   :  { %v183_v60 = vmul.f32 %v324_v55, %v180_v58  ;;  %v199_v5 = vmul.f32 %v323_v63, %v196_v0 }
 0x18d   :  { %v184_v61 = vadd.f32 %v183_v60, %v176_v59 }
 0x18f   :  { %v192_v2 = vadd.f32 %v191_v62, %v184_v61 }
 0x191   :  { %v200_v9 = vadd.f32 %v199_v5, %v192_v2 }
 0x193   :  { %v204_v7 = vpop.permute.xlu1 %203 }
 0x194   :  { %v207_v10 = vmul.f32 %v325_v3, %v204_v7 }
 0x196   :  { %v208_v12 = vadd.f32 %v207_v10, %v200_v9 }
 0x198   :  { %v216_v13 = vadd.f32 %v215_v11, %v208_v12 }
 0x19a   :  { %v221_v14 = vsel %vm220_vm0, %v216_v13, -1e+30  ;;  %217 = vst [vmem:[#allocation8] sm:$0xff] %v216_v13 }
 0x19b   :  { %222 = vmax.xlane.f32.xlu1 %v221_v14  ;;  %255 = dma.vmem_to_hbm [thread:$0]  %s251_s4, 128, %s253_s19, [#allocation4]  }
 0x20e   :  { %v223_v15 = vpop.xlane.xlu1 %222 }
 0x20f   :  { %v224_v16 = vsub.f32 %v221_v14, %v223_v15 }
 0x211   :  { %v225_v17 = vmul.f32 1.442695, %v224_v16 }
 0x213   :  { %326 = vpow2.f32 %v225_v17 }
 0x219   :  { %v327_v18 = vpop.eup %326 }
 0x21a   :  { %227 = vadd.xlane.f32.xlu2 %v327_v18 }
 0x28d   :  { %v228_v19 = vpop.xlane.xlu2 %227 }
 0x28e   :  { %328 = vrcp.f32 %v228_v19  ;;  %v240_v23 = vand.u32 2147483648, %v228_v19  ;;  %v238_v25 = vand.u32 2147483647, %v228_v19  ;;  %vm234_vm2 = vweird.f32 %v228_v19 }
 0x290   :  { %v241_v27 = vor.u32 1.1754944e-38, %v240_v23  ;;  %vm239_vm4 = vcmp.eq.f32.partialorder %v238_v25, 8.507059e+37 }
 0x294   :  { %v329_v20 = vpop.eup %328 }
 0x295   :  { %v230_v21 = vmul.f32 %v329_v20, %v228_v19  ;;  %vm235_vm1 = vweird.f32 %v329_v20 }
 0x296   :  { %vm236_vm3 = vmor %vm234_vm2, %vm235_vm1 }
 0x297   :  { %v231_v22 = vsub.f32 1.0, %v230_v21 }
 0x299   :  { %v232_v24 = vmul.f32 %v329_v20, %v231_v22 }
 0x29b   :  { %v233_v26 = vadd.f32 %v329_v20, %v232_v24 }
 0x29d   :  { %v237_v28 = vsel %vm236_vm3, %v329_v20, %v233_v26 }
 0x29e   :  { %v242_v29 = vsel %vm239_vm4, %v241_v27, %v237_v28 }
 0x29f   :  { %v243_v30 = vmul.f32 %v327_v18, %v242_v29 }
 0x2a1   :  { %244 = vst [vmem:[#allocation9] sm:$0xff] %v243_v30 }
 0x2a2   :  { %266 = dma.vmem_to_hbm [thread:$0]  %s262_s7, 128, %s264_s23, [#allocation10]  }
 0x2a3   :  { %454 = dma.done.wait [#allocation4], 128  }
 0x2a4   :  { %455 = vsyncadd [#allocation4], 4294967168 }
 0x2a5   :  { %456 = dma.done.wait [#allocation10], 128  }
 0x2a6   :  { %457 = vsyncadd [#allocation10], 4294967168 }
 0x2a7   :  { %275 = vsyncpa [#allocation3], 1 }
 0x2a8   :  { %276 = vsyncpa [#allocation6], 1 }
 0x2a9   :  { %277 = vsyncpa [#allocation4], 1 }
 0x2aa   :  { %278 = vsyncpa [#allocation10], 1 }

</bundles_post_ra>
